<compile_context>
chip_gen: v7x
topology: tpu7x:2x2x1
jax: 0.10.0
libtpu: 0.0.40
codegen_flags: <defaults>
</compile_context>

<pallas_src>
import math

import jax
import jax.numpy as jnp
from jax import lax
from jax.experimental import pallas as pl
from jax.experimental.pallas import tpu as pltpu


def _make_kernel(matmul_dtype):
    def kernel(state_ref, memory_ref, bias_ref,
               wq_t_ref, bq_ref, wk_t_ref, bk_ref,
               out_ref):
        BB, Np, E = state_ref.shape
        V = memory_ref.shape[1]

        # Fold the BB batches into the MXU M dimension for the batch-invariant
        # projections: one [BB*V, E] x [E, E] and one [BB*Np, E] x [E, E] matmul.
        memory = memory_ref[...].reshape(BB * V, E)
        state = state_ref[...].reshape(BB * Np, E)

        q = jnp.dot(memory, wq_t_ref[...],
                    preferred_element_type=jnp.float32) + bq_ref[...]   # [BB*V, E] f32
        k = jnp.dot(state, wk_t_ref[...],
                    preferred_element_type=jnp.float32) + bk_ref[...]   # [BB*Np, E] f32

        # Batched scores [BB, V, Np] = q . k^T per batch.
        # (1/sqrt(E) already folded into Wq / bq in the wrapper.)
        qb = q.astype(matmul_dtype).reshape(BB, V, E)
        kb = k.astype(matmul_dtype).reshape(BB, Np, E)
        scores = lax.dot_general(
            qb, kb, (((2,), (2,)), ((0,), (0,))),
            preferred_element_type=jnp.float32)                          # [BB, V, Np]

        # Additive mask bias: 0 (valid) / -1e9 (masked or lane-padding),
        # broadcast over the vehicle axis.
        scores = scores + bias_ref[...]

        # Numerically stable softmax over nodes, in f32 on every generation.
        m = jnp.max(scores, axis=-1, keepdims=True)
        e = jnp.exp(scores - m)
        s = jnp.sum(e, axis=-1, keepdims=True)
        out_ref[...] = (e * pl.reciprocal(s, approx=True)).astype(out_ref.dtype)

    return kernel


def _choose_block_batches(B, N_pad, V, E, in_itemsize,
                          target_rows=512, min_grid_steps=2,
                          vmem_budget=12 * 1024 * 1024):
    """Largest divisor of B whose folded row count stays near the MXU sweet
    spot AND whose (double-buffered) blocks fit a conservative VMEM budget,
    preferring to keep >= min_grid_steps grid steps (v7x has two TensorCores
    per chip)."""

    def block_bytes(bb):
        state_b = bb * N_pad * E * in_itemsize
        memory_b = bb * V * E * in_itemsize
        bias_b = bb * N_pad * 4
        out_b = bb * V * N_pad * 4
        weights = 2 * E * E * in_itemsize + 2 * E * 4
        # double-buffered inputs + outputs, weights resident (x2 for safety)
        return 2 * (state_b + memory_b + bias_b + out_b) + 2 * weights

    divisors = [d for d in range(1, B + 1) if B % d == 0]
    fits = [d for d in divisors if block_bytes(d) <= vmem_budget]
    if not fits:
        fits = [1]

    rows = max(V, N_pad)
    good = [d for d in fits if d * rows <= target_rows and B // d >= min_grid_steps]
    if good:
        return max(good)
    good = [d for d in fits if d * rows <= target_rows]
    if good:
        return max(good)
    return min(fits)


def attention_layer(state_embeddings, memory_embeddings, mask, params,
                    *, matmul_dtype=jnp.float32):
    """
    state_embeddings: [B, N, E] f32
    memory_embeddings: [B, V, E] f32
    mask: [B, N] bool/int (True/1 = masked) or None
    params: dict with 'wq' [E,E], 'bq' [E], 'wk' [E,E], 'bk' [E]
            (PyTorch nn.Linear convention: y = x @ W^T + b)
    matmul_dtype: jnp.float32 (exact) or jnp.bfloat16 (v6e/v7x MXU-native;
                  accumulation stays f32)
    returns probs [B, V, N] f32
    """
    B, N, E = state_embeddings.shape
    _, V, _ = memory_embeddings.shape

    # Lane-dense output / K rows: pad node axis up to a multiple of 128.
    N_pad = pl.cdiv(N, 128) * 128

    state_p = state_embeddings
    if N_pad != N:
        state_p = jnp.pad(state_embeddings, ((0, 0), (0, N_pad - N), (0, 0)))

    # Additive mask bias [B, 1, N_pad]: 0 where valid, -1e9 where masked or padded.
    if mask is None:
        bias_core = jnp.zeros((B, N), jnp.float32)
    else:
        bias_core = jnp.where(mask.reshape(B, N), jnp.float32(-1e9), jnp.float32(0.0))
    bias = jnp.pad(bias_core, ((0, 0), (0, N_pad - N)),
                   constant_values=jnp.float32(-1e9)).reshape(B, 1, N_pad)

    # Fold the 1/sqrt(E) score scale into Wq and bq (one-time parameter prep).
    inv_scale = 1.0 / math.sqrt(float(E))
    wq_t = (params["wq"].T.astype(jnp.float32) * inv_scale).astype(matmul_dtype)  # [E, E]
    wk_t = params["wk"].T.astype(matmul_dtype)                                    # [E, E]
    bq = (params["bq"].astype(jnp.float32) * inv_scale).reshape(1, E)
    bk = params["bk"].astype(jnp.float32).reshape(1, E)

    state_in = state_p.astype(matmul_dtype)
    memory_in = memory_embeddings.astype(matmul_dtype)

    # Batch blocking: fold BB batches per grid step (keeps >= 2 steps when
    # possible for v7x's two TensorCores; blocks kept within a VMEM budget).
    in_itemsize = jnp.dtype(matmul_dtype).itemsize
    BB = _choose_block_batches(B, N_pad, V, E, in_itemsize)
    grid = (B // BB,)

    kernel = _make_kernel(matmul_dtype)

    grid_spec = pltpu.PrefetchScalarGridSpec(
        num_scalar_prefetch=0,
        grid=grid,
        in_specs=[
            pl.BlockSpec((BB, N_pad, E), lambda b: (b, 0, 0)),   # state (padded)
            pl.BlockSpec((BB, V, E), lambda b: (b, 0, 0)),       # memory
            pl.BlockSpec((BB, 1, N_pad), lambda b: (b, 0, 0)),   # additive mask bias
            pl.BlockSpec((E, E), lambda b: (0, 0)),              # Wq^T (scaled)
            pl.BlockSpec((1, E), lambda b: (0, 0)),              # bq (scaled)
            pl.BlockSpec((E, E), lambda b: (0, 0)),              # Wk^T
            pl.BlockSpec((1, E), lambda b: (0, 0)),              # bk
        ],
        out_specs=pl.BlockSpec((BB, V, N_pad), lambda b: (b, 0, 0)),
    )

    def _nbytes(x):
        return x.size * jnp.dtype(x.dtype).itemsize

    cost = pl.CostEstimate(
        flops=2 * B * ((V + N_pad) * E * E + V * N_pad * E) + 5 * B * V * N_pad,
        transcendentals=B * V * N_pad,
        bytes_accessed=(_nbytes(state_in) + _nbytes(memory_in) + _nbytes(bias)
                        + 2 * E * E * in_itemsize + 2 * E * 4
                        + B * V * N_pad * 4),
    )

    probs_pad = pl.pallas_call(
        kernel,
        out_shape=jax.ShapeDtypeStruct((B, V, N_pad), jnp.float32),
        grid_spec=grid_spec,
        compiler_params=pltpu.CompilerParams(
            dimension_semantics=("parallel",)),
        cost_estimate=cost,
    )(state_in, memory_in, bias, wq_t, bq, wk_t, bk)

    # Crop the lane-padding back off (padded columns hold ~0 probability).
    return probs_pad[:, :, :N]


def _reference(state, memory, mask, params):
    E = state.shape[-1]
    q = memory @ params["wq"].T + params["bq"]
    k = state @ params["wk"].T + params["bk"]
    scores = jnp.einsum("bve,bne->bvn", q, k) / jnp.sqrt(jnp.float32(E))
    if mask is not None:
        scores = jnp.where(mask[:, None, :], -1e9, scores)
    return jax.nn.softmax(scores, axis=-1)


if __name__ == "__main__":
    B, N, V, E = 2, 16, 8, 32
    key = jax.random.PRNGKey(0)
    k1, k2, k3, k4, k5, k6, k7 = jax.random.split(key, 7)

    # Deterministic parameter init (nn.Linear shapes: W [out, in], b [out]).
    bound = 1.0 / math.sqrt(E)
    params = {
        "wq": jax.random.uniform(k1, (E, E), jnp.float32, -bound, bound),
        "bq": jax.random.uniform(k2, (E,), jnp.float32, -bound, bound),
        "wk": jax.random.uniform(k3, (E, E), jnp.float32, -bound, bound),
        "bk": jax.random.uniform(k4, (E,), jnp.float32, -bound, bound),
    }

    state = jax.random.normal(k5, (B, N, E), jnp.float32)
    memory = jax.random.normal(k6, (B, V, E), jnp.float32)
    mask = jax.random.uniform(k7, (B, N)) < 0.25  # True = masked

    ref = _reference(state, memory, mask, params)

    # f32 MXU path (exact apart from the approx EUP reciprocal).
    probs = attention_layer(state, memory, mask, params)
    probs = jax.block_until_ready(probs)
    assert probs.shape == (B, V, N)
    assert jnp.allclose(probs, ref, atol=1e-2, rtol=1e-2), "f32 path mismatch vs reference"
    assert jnp.allclose(jnp.sum(probs, axis=-1), 1.0, atol=1e-2)

    # bf16 MXU-input path (v6e/v7x friendly), f32 accumulation + f32 softmax.
    probs_bf16 = attention_layer(state, memory, mask, params,
                                 matmul_dtype=jnp.bfloat16)
    probs_bf16 = jax.block_until_ready(probs_bf16)
    assert probs_bf16.shape == (B, V, N)
    assert jnp.allclose(probs_bf16, ref, atol=5e-2, rtol=5e-2), "bf16 path mismatch vs reference"

    # No-mask path (mask=None branch of the module).
    probs_nm = attention_layer(state, memory, None, params)
    probs_nm = jax.block_until_ready(probs_nm)
    assert jnp.allclose(probs_nm, _reference(state, memory, None, params),
                        atol=1e-2, rtol=1e-2), "no-mask path mismatch vs reference"

    print("KERNEL_OK")
</pallas_src>

<mosaic_0001>
module attributes {stable_mosaic.version = 11 : i64} {
  func.func @kernel(%arg0: i32, %arg1: memref<1x128x32xf32, #tpu.memory_space<vmem>>, %arg2: memref<1x8x32xf32, #tpu.memory_space<vmem>>, %arg3: memref<1x1x128xf32, #tpu.memory_space<vmem>>, %arg4: memref<32x32xf32, #tpu.memory_space<vmem>>, %arg5: memref<1x32xf32, #tpu.memory_space<vmem>>, %arg6: memref<32x32xf32, #tpu.memory_space<vmem>>, %arg7: memref<1x32xf32, #tpu.memory_space<vmem>>, %arg8: memref<1x8x128xf32, #tpu.memory_space<vmem>>) attributes {dimension_semantics = [#tpu.dimension_semantics<parallel>], iteration_bounds = array<i64: 2>, scalar_prefetch = 0 : i64, scratch_operands = 0 : i64, tpu.core_type = #tpu.core_type<tc>, window_params = [{transform_indices = @transform_0, window_bounds = array<i64: 1, 128, 32>}, {transform_indices = @transform_1, window_bounds = array<i64: 1, 8, 32>}, {transform_indices = @transform_2, window_bounds = array<i64: 1, 1, 128>}, {pipeline_mode = #tpu.pipeline_mode<synchronous>, transform_indices = @transform_3, window_bounds = array<i64: 32, 32>}, {pipeline_mode = #tpu.pipeline_mode<synchronous>, transform_indices = @transform_4, window_bounds = array<i64: 1, 32>}, {pipeline_mode = #tpu.pipeline_mode<synchronous>, transform_indices = @transform_5, window_bounds = array<i64: 32, 32>}, {pipeline_mode = #tpu.pipeline_mode<synchronous>, transform_indices = @transform_6, window_bounds = array<i64: 1, 32>}, {transform_indices = @transform_7, window_bounds = array<i64: 1, 8, 128>}]} {
    %c0 = arith.constant 0 : index
    %c0_0 = arith.constant 0 : index
    %c0_1 = arith.constant 0 : index
    %0 = vector.load %arg2[%c0, %c0_0, %c0_1] : memref<1x8x32xf32, #tpu.memory_space<vmem>>, vector<1x8x32xf32>
    %1 = vector.shape_cast %0 : vector<1x8x32xf32> to vector<8x32xf32>
    %c0_2 = arith.constant 0 : index
    %c0_3 = arith.constant 0 : index
    %c0_4 = arith.constant 0 : index
    %2 = vector.load %arg1[%c0_2, %c0_3, %c0_4] : memref<1x128x32xf32, #tpu.memory_space<vmem>>, vector<1x128x32xf32>
    %3 = vector.shape_cast %2 : vector<1x128x32xf32> to vector<128x32xf32>
    %c0_5 = arith.constant 0 : index
    %c0_6 = arith.constant 0 : index
    %4 = vector.load %arg4[%c0_5, %c0_6] : memref<32x32xf32, #tpu.memory_space<vmem>>, vector<32x32xf32>
    %cst = arith.constant dense<0.000000e+00> : vector<8x32xf32>
    %5 = tpu.matmul %1, %4, %cst {dimension_numbers = #tpu.dot_dimension_numbers<[1], [0], [0], [1], [0, 0, 1, 1], [], []>} : vector<8x32xf32>, vector<32x32xf32>, vector<8x32xf32> -> vector<8x32xf32>
    %c0_7 = arith.constant 0 : index
    %c0_8 = arith.constant 0 : index
    %6 = vector.load %arg5[%c0_7, %c0_8] : memref<1x32xf32, #tpu.memory_space<vmem>>, vector<1x32xf32>
    %7 = vector.broadcast %6 : vector<1x32xf32> to vector<8x32xf32>
    %8 = arith.addf %5, %7 : vector<8x32xf32>
    %c0_9 = arith.constant 0 : index
    %c0_10 = arith.constant 0 : index
    %9 = vector.load %arg6[%c0_9, %c0_10] : memref<32x32xf32, #tpu.memory_space<vmem>>, vector<32x32xf32>
    %cst_11 = arith.constant dense<0.000000e+00> : vector<128x32xf32>
    %10 = tpu.matmul %3, %9, %cst_11 {dimension_numbers = #tpu.dot_dimension_numbers<[1], [0], [0], [1], [0, 0, 1, 1], [], []>} : vector<128x32xf32>, vector<32x32xf32>, vector<128x32xf32> -> vector<128x32xf32>
    %c0_12 = arith.constant 0 : index
    %c0_13 = arith.constant 0 : index
    %11 = vector.load %arg7[%c0_12, %c0_13] : memref<1x32xf32, #tpu.memory_space<vmem>>, vector<1x32xf32>
    %12 = vector.broadcast %11 : vector<1x32xf32> to vector<128x32xf32>
    %13 = arith.addf %10, %12 : vector<128x32xf32>
    %14 = vector.shape_cast %8 : vector<8x32xf32> to vector<1x8x32xf32>
    %15 = vector.shape_cast %13 : vector<128x32xf32> to vector<1x128x32xf32>
    %cst_14 = arith.constant dense<0.000000e+00> : vector<1x8x128xf32>
    %16 = tpu.matmul %14, %15, %cst_14 {dimension_numbers = #tpu.dot_dimension_numbers<[2], [2], [1], [1], [0, 0, 0, 1, 1, 1], [0], [0]>} : vector<1x8x32xf32>, vector<1x128x32xf32>, vector<1x8x128xf32> -> vector<1x8x128xf32>
    %c0_15 = arith.constant 0 : index
    %c0_16 = arith.constant 0 : index
    %c0_17 = arith.constant 0 : index
    %17 = vector.load %arg3[%c0_15, %c0_16, %c0_17] : memref<1x1x128xf32, #tpu.memory_space<vmem>>, vector<1x1x128xf32>
    %18 = vector.broadcast %17 : vector<1x1x128xf32> to vector<1x8x128xf32>
    %19 = arith.addf %16, %18 : vector<1x8x128xf32>
    %cst_18 = arith.constant dense<0xFF800000> : vector<1x8xf32>
    %20 = vector.multi_reduction <maximumf>, %19, %cst_18 [2] : vector<1x8x128xf32> to vector<1x8xf32>
    %21 = vector.shape_cast %20 : vector<1x8xf32> to vector<1x8x1xf32>
    %22 = vector.broadcast %21 : vector<1x8x1xf32> to vector<1x8x128xf32>
    %23 = arith.subf %19, %22 : vector<1x8x128xf32>
    %24 = math.exp %23 : vector<1x8x128xf32>
    %cst_19 = arith.constant dense<0.000000e+00> : vector<1x8xf32>
    %25 = vector.multi_reduction <add>, %24, %cst_19 [2] : vector<1x8x128xf32> to vector<1x8xf32>
    %26 = vector.shape_cast %25 : vector<1x8xf32> to vector<1x8x1xf32>
    %27 = tpu.reciprocal %26 {approx = true} : vector<1x8x1xf32> -> vector<1x8x1xf32>
    %28 = vector.broadcast %27 : vector<1x8x1xf32> to vector<1x8x128xf32>
    %29 = arith.mulf %24, %28 : vector<1x8x128xf32>
    %c0_20 = arith.constant 0 : index
    %c0_21 = arith.constant 0 : index
    %c0_22 = arith.constant 0 : index
    %30 = vector.load %arg8[%c0_20, %c0_21, %c0_22] : memref<1x8x128xf32, #tpu.memory_space<vmem>>, vector<1x8x128xf32>
    tpu.vector_store %arg8[%c0_20, %c0_21, %c0_22], %29 {strides = array<i32>} : memref<1x8x128xf32, #tpu.memory_space<vmem>>, vector<1x8x128xf32>,
    return
  }
  func.func @transform_0(%arg0: i32) -> (i32, i32, i32) {
    %c0_i32 = arith.constant 0 : i32
    %c0_i32_0 = arith.constant 0 : i32
    %c0_i32_1 = arith.constant 0 : i32
    return %arg0, %c0_i32, %c0_i32_0 : i32, i32, i32
  }
  func.func @transform_1(%arg0: i32) -> (i32, i32, i32) {
    %c0_i32 = arith.constant 0 : i32
    %c0_i32_0 = arith.constant 0 : i32
    %c0_i32_1 = arith.constant 0 : i32
    return %arg0, %c0_i32, %c0_i32_0 : i32, i32, i32
  }
  func.func @transform_2(%arg0: i32) -> (i32, i32, i32) {
    %c0_i32 = arith.constant 0 : i32
    %c0_i32_0 = arith.constant 0 : i32
    %c0_i32_1 = arith.constant 0 : i32
    return %arg0, %c0_i32, %c0_i32_0 : i32, i32, i32
  }
  func.func @transform_3(%arg0: i32) -> (i32, i32) {
    %c0_i32 = arith.constant 0 : i32
    %c0_i32_0 = arith.constant 0 : i32
    %c0_i32_1 = arith.constant 0 : i32
    return %c0_i32, %c0_i32_0 : i32, i32
  }
  func.func @transform_4(%arg0: i32) -> (i32, i32) {
    %c0_i32 = arith.constant 0 : i32
    %c0_i32_0 = arith.constant 0 : i32
    %c0_i32_1 = arith.constant 0 : i32
    return %c0_i32, %c0_i32_0 : i32, i32
  }
  func.func @transform_5(%arg0: i32) -> (i32, i32) {
    %c0_i32 = arith.constant 0 : i32
    %c0_i32_0 = arith.constant 0 : i32
    %c0_i32_1 = arith.constant 0 : i32
    return %c0_i32, %c0_i32_0 : i32, i32
  }
  func.func @transform_6(%arg0: i32) -> (i32, i32) {
    %c0_i32 = arith.constant 0 : i32
    %c0_i32_0 = arith.constant 0 : i32
    %c0_i32_1 = arith.constant 0 : i32
    return %c0_i32, %c0_i32_0 : i32, i32
  }
  func.func @transform_7(%arg0: i32) -> (i32, i32, i32) {
    %c0_i32 = arith.constant 0 : i32
    %c0_i32_0 = arith.constant 0 : i32
    %c0_i32_1 = arith.constant 0 : i32
    return %arg0, %c0_i32, %c0_i32_0 : i32, i32, i32
  }
}

</mosaic_0001>

<bundles_post_ra>
// kernel: tpu_custom_call.1
= control target key start
LH: loop header
LB: loop body
LE: loop exit
PB: predicated region body
PF: predicated region fallthrough
CT: control target
= control target key end

     0   :  { %12 = vsyncpa [#allocation3], 0  ;;  %s1425_s0 = inlined_call_operand.vmem [shape: f32[2,128,32], index: 0, kind: input, shape index: {}]   ;;  %s1426_s1 = inlined_call_operand.vmem [shape: f32[2,8,32], index: 1, kind: input, shape index: {}]   ;;  %s1427_s2 = inlined_call_operand.vmem [shape: f32[2,1,128], index: 2, kind: input, shape index: {}]   ;;  %s1428_s3 = inlined_call_operand.vmem [shape: f32[32,32], index: 3, kind: input, shape index: {}]   ;;  %s1429_s4 = inlined_call_operand.vmem [shape: f32[1,32], index: 4, kind: input, shape index: {}]   ;;  %s1430_s5 = inlined_call_operand.vmem [shape: f32[32,32], index: 5, kind: input, shape index: {}]   ;;  %s1431_s6 = inlined_call_operand.vmem [shape: f32[1,32], index: 6, kind: input, shape index: {}]   ;;  %s1432_s7 = inlined_call_operand.hbm [shape: f32[2,8,128], index: 7, kind: output, shape index: {}]  }
   0x1   :  { %14 = vsyncpa [#allocation3 + $0x1], 0  ;;  %s1216_s24 = smov 0   ;;  %s1218_s25 = smov 0  }
   0x2   :  { %s1220_s26 = smov 0   ;;  %s1222_s27 = smov 0  }
   0x3 LB: > { %s1237_s28 = sadd.s32 4294967295, %s1170_s27   ;;  %s846_s29 = sadd.s32 4294967294, %s1170_s27   ;;  %s1170_s27 = sphi %s1222_s27, %s1440_s27   ;;  %s1166_s26 = sphi %s1220_s26, %s1439_s26   ;;  %s1162_s25 = sphi %s1218_s25, %s1438_s25   ;;  %s1158_s24 = sphi %s1216_s24, %s1437_s24  }
   0x4   : > { %s1241_s30 = sadd.s32 1, %s1170_s27   ;;  %s189_s8 = sadd.s32 1, %s1166_s26 }
   0x5   : > { %s186_s9 = ssub.s32 %s1170_s27, %s1241_s30  ;;  %p199_p0 = scmp.ne.s32.totalorder %s1166_s26, %s1162_s25 }
   0x6   : > { %p187_p1 = scmp.eq.s32.totalorder %s186_s9, 0  ;;  %p200_p2 = scmp.eq.s32.totalorder %s1237_s28, 1 }
   0x7   : > { %p205_p3 = scmp.ne.s32.totalorder %s1162_s25, %s1158_s24  ;;  %p206_p4 = scmp.eq.s32.totalorder %s846_s29, 1 }
   0x8   : > { %s1252_s10 = scalar_select %p187_p1, %s1166_s26, %s189_s8  }
   0x9   : > { %p1254_p5 = por %p200_p2, %p199_p0  ;;  %p1258_p6 = por %p206_p4, %p205_p3 }
   0xa   : > { %p849_p7 = scmp.ge.s32.totalorder %s1170_s27, 1  ;;  %p257_p8 = scmp.lt.s32.totalorder %s1170_s27, 3 }
   0xc   : > { %p258_p9 = pnand %p849_p7, %p257_p8 }
   0xd   : > { %v325_v0 = vld [vmem:[%s1428_s3] sm:$0xff] (!%p258_p9)  ;;  %v326_v1 = vld [vmem:[%s1428_s3 + $0x8] sm:$0xff] (!%p258_p9)  ;;  %v327_v2 = vld [vmem:[%s1428_s3 + $0x10] sm:$0xff] (!%p258_p9)  ;;  %v1172_v3 = vmov (!%p258_p9), 0.0|0.0   ;;  %vm1173_vm0 = vmmov (!%p258_p9), 0   ;;  %v1174_v6 = vmov (!%p258_p9), 0.0  }
   0xe   : > { %261 = sbr.rel (%p258_p9) target bundleno = 854 (0x356), region = 48  ;;  %1016 = vmatprep.subr.bf16.mxu1 (!%p258_p9), %v1172_v3  ;;  %v1017_v4 = vpack.c.bf16 (!%p258_p9), %v326_v1, %v325_v0  ;;  %v328_v5 = vld [vmem:[%s1428_s3 + $0x18] sm:$0xff] (!%p258_p9)  ;;  %946 = vmatprep.mubr.msk.f32.mxu1 (!%p258_p9), %vm1173_vm0, %v1174_v6  ;;  %p296_p10 = scmp.lt.s32.totalorder (!%p258_p9), %s1237_s28, 1  ;;  %v410_v7 = vld [vmem:[%s1430_s5] sm:$0xff] (!%p258_p9)  ;;  %v411_v8 = vld [vmem:[%s1430_s5 + $0x8] sm:$0xff] (!%p258_p9)  ;;  %vm336_vm1 = vcmask (!%p258_p9), 261120  }
   0xf   : > { %1030 = vmatprep.subr.bf16.mxu0 (!%p258_p9), %v1172_v3  ;;  %1013 = vmatprep.mubr.msk.f32.mxu0 (!%p258_p9), %vm1173_vm0, %v1174_v6  ;;  %v1020_v9 = vpack.c.bf16 (!%p258_p9), %v328_v5, %v327_v2  ;;  %v1022_v10 = vpack.c.bf16 (!%p258_p9), %v411_v8, %v410_v7  ;;  %v412_v11 = vld [vmem:[%s1430_s5 + $0x10] sm:$0xff] (!%p258_p9)  ;;  %v413_v12 = vld [vmem:[%s1430_s5 + $0x18] sm:$0xff] (!%p258_p9)  ;;  %v856_v33 = vld [vmem:[%s1431_s6] ss:$0 sm:$0xff] (!%p258_p9)  ;;  %s293_s18 = sand.u32 (!%p258_p9), 1, %s1162_s25  }
  0x10   : > { %1018 = vmatpush3.bf16.msra.mxu1 (!%p258_p9), %v1017_v4  ;;  %v1026_v14 = vpack.c.bf16 (!%p258_p9), %v413_v12, %v412_v11  ;;  %vm1343_vm2 = vmpackc.low (!%p258_p9), %vm336_vm1, %vm336_vm1  ;;  %v854_v12 = vld [vmem:[%s1429_s4] ss:$0 sm:$0xff] (!%p258_p9)  ;;  %s850_s19 = sshll.u32 (!%p258_p9), %s293_s18, 3 }
  0x11   : > { %1019 = vmatprep.subr.bf16.mxu1 (!%p258_p9), %v1172_v3  ;;  %s295_s21 = scalar_lea.vmem (!%p258_p9), [#allocation2], %s850_s19 }
  0x14   : > { %1021 = vmatpush3.bf16.msra.mxu1 (!%p258_p9), %v1020_v9 }
  0x15   : > { %s1286_s8 = scalar_select %p296_p10, %s1237_s28, 1  ;;  %1023 = vmatprep.subr.bf16.mxu1 %v1022_v10 }
  0x17   : > { %s895_s9 = sshll.u32 %s1286_s8, 7  ;;  %s853_s13 = sshll.u32 %s1286_s8, 3 }
  0x18   : > { %s1300_s20 = scalar_lea.vmem %s1425_s0, %s895_s9  ;;  %s304_s23 = scalar_lea.vmem %s1426_s1, %s853_s13 }
  0x19   : > { %v308_v13 = vld [vmem:[%s304_s23] sm:$0xff]  ;;  %v310_v16 = vld [vmem:[%s1300_s20 + $0x8] sm:$0xff]  ;;  %v311_v17 = vld [vmem:[%s1300_s20 + $0x10] sm:$0xff]  ;;  %s307_s17 = scalar_lea.vmem %s1427_s2, %s1286_s8  ;;  %s766_s8 = sshll.u32 %s295_s21, 4  ;;  %s1385_s8 = int_to_ptr.vmem [resolvable:$true] %s766_s8 }
  0x1a   : > { %v309_v15 = vld [vmem:[%s1300_s20] sm:$0xff]  ;;  %947 = vmatmul.mubr.msk.f32.vlgmr.msra.gmra.mrb[0].mxu1 %vm336_vm1, %v308_v13  ;;  %v312_v18 = vld [vmem:[%s1300_s20 + $0x18] sm:$0xff]  ;;  %v314_v20 = vld [vmem:[%s1300_s20 + $0x28] sm:$0xff]  ;;  %s753_s9 = scalar_lea.sflag [#allocation3], %s293_s18  ;;  %s1108_s13 = scalar_lea.vmem %s1385_s8, 128 }
  0x1b   : > { %1025 = vmatpush3.bf16.msra.mxu1 %v1022_v10  ;;  %957 = vmatprep.mubr.msk.f32.mxu1 %vm336_vm1, %v309_v15  ;;  %v313_v19 = vld [vmem:[%s1300_s20 + $0x20] sm:$0xff]  ;;  %v315_v21 = vld [vmem:[%s1300_s20 + $0x30] sm:$0xff]  ;;  %v316_v22 = vld [vmem:[%s1300_s20 + $0x38] sm:$0xff]  ;;  %p1109_p11 = scmp.ne.s32.totalorder %s1385_s8, %s1108_s13 }
  0x1c   : > { %1027 = vmatprep.subr.bf16.mxu1 %v1026_v14  ;;  %v317_v23 = vld [vmem:[%s1300_s20 + $0x40] sm:$0xff]  ;;  %v318_v24 = vld [vmem:[%s1300_s20 + $0x48] sm:$0xff]  ;;  %v319_v25 = vld [vmem:[%s1300_s20 + $0x50] sm:$0xff] }
  0x1d   : > { %v320_v26 = vld [vmem:[%s1300_s20 + $0x58] sm:$0xff]  ;;  %v321_v27 = vld [vmem:[%s1300_s20 + $0x60] sm:$0xff]  ;;  %v322_v28 = vld [vmem:[%s1300_s20 + $0x68] sm:$0xff]  ;;  %p1110_p12 = pnand %p1109_p11, %p1254_p5 }
  0x1e   : > { %v323_v29 = vld [vmem:[%s1300_s20 + $0x70] sm:$0xff]  ;;  %v324_v30 = vld [vmem:[%s1300_s20 + $0x78] sm:$0xff]  ;;  %s892_s20 = sshll.u32 %s1237_s28, 7  ;;  %s1175_s28 = smov [#allocation2]  }
  0x1f   : > { %1029 = vmatpush3.bf16.msra.mxu1 %v1026_v14  ;;  %v873_v14 = vld [vmem:[%s307_s17] ss:$0 sm:$0xff]  ;;  %s1383_s29 = scalar_lea.hbm %s1432_s7, %s892_s20  ;;  %p1111_p13 = pneg %p1110_p12 }
  0x20   : > { %s1112_s14 = sshll.u32 %s1175_s28, 4  ;;  %s1113_s14 = int_to_ptr.vmem [resolvable:$false] %s1112_s14 }
  0x21   : > { %s1114_s15 = scalar_lea.vmem %s1113_s14, 256  ;;  %p1115_p0 = scmp.lt.s32.totalorder %s1385_s8, %s1113_s14 }
  0x22   : > { %958 = vmatmul.mubr.msk.f32.vlgmr.msra.gmra.mrb[2].mxu1 %vm336_vm1, %v310_v16  ;;  %p1116_p1 = scmp.lt.s32.totalorder %s1114_s15, %s1108_s13 }
  0x23   : > { %960 = vmatprep.mubr.msk.f32.mxu1 %vm336_vm1, %v311_v17 }
  0x24   : > { %p1117_p2 = por %p1116_p1, %p1115_p0 }
  0x26   : > { %961 = vmatmul.mubr.msk.f32.gmra.mrb[4].mxu1 %vm336_vm1, %v312_v18  ;;  %p1118_p3 = pnand %p1117_p2, %p1111_p13 }
  0x27   : > { %963 = vmatprep.mubr.msk.f32.mxu1 %vm336_vm1, %v313_v19 }
  0x2a   : > { %964 = vmatmul.mubr.msk.f32.gmra.mrb[6].mxu1 %vm336_vm1, %v314_v20 }
  0x2b   : > { %966 = vmatprep.mubr.msk.f32.mxu1 %vm336_vm1, %v315_v21 }
  0x2e   : > { %967 = vmatmul.mubr.msk.f32.gmra.mrb[8].mxu1 %vm336_vm1, %v316_v22 }
  0x2f   : > { %969 = vmatprep.mubr.msk.f32.mxu1 %vm336_vm1, %v317_v23 }
  0x32   : > { %970 = vmatmul.mubr.msk.f32.gmra.mrb[10].mxu1 %vm336_vm1, %v318_v24 }
  0x33   : > { %972 = vmatprep.mubr.msk.f32.mxu1 %vm336_vm1, %v319_v25 }
  0x36   : > { %973 = vmatmul.mubr.msk.f32.gmra.mrb[12].mxu1 %vm336_vm1, %v320_v26 }
  0x37   : > { %975 = vmatprep.mubr.msk.f32.mxu1 %vm336_vm1, %v321_v27 }
  0x3a   : > { %976 = vmatmul.mubr.msk.f32.gmra.mrb[14].mxu1 %vm336_vm1, %v322_v28 }
  0x3b   : > { %978 = vmatprep.mubr.msk.f32.mxu1 %vm336_vm1, %v323_v29 }
  0x3e   : > { %979 = vmatmul.mubr.msk.f32.gmra.mrb[16].mxu1 %vm336_vm1, %v324_v30 }
  0xed   : > { %v406_v31 = vpop.f32.mrb[0].mxu1 }
  0xee   : > { %v948_v32 = vpop.f32.mrb[1].mxu1  ;;  %v407_v13 = vadd.f32 %v854_v12, %v406_v31 }
  0xf5   : > { %v959_v34 = vpop.f32.mrb[2].mxu1 }
  0xf6   : > { %v541_v35 = vadd.f32 %v959_v34, %v856_v33  ;;  %v535_v36 = vpop.f32.mrb[3].mxu1 }
  0xf7   : > { %v536_v37 = vadd.f32 %v856_v33, %v535_v36 }
  0xf9   : > { %v1031_v39 = vpack.c.bf16 %v541_v35, %v536_v37  ;;  %v962_v40 = vpop.f32.mrb[4].mxu1 }
  0xfa   : > { %v551_v41 = vadd.f32 %v962_v40, %v856_v33  ;;  %v545_v42 = vpop.f32.mrb[5].mxu1 }
  0xfb   : > { %1033 = vmatpush3.bf16.xpose.msk.msra.mxu0 %vm1343_vm2, %v1031_v39  ;;  %v546_v43 = vadd.f32 %v856_v33, %v545_v42 }
  0xfc   : > { %1034 = vmatprep.subr.bf16.mxu0 %v1172_v3 }
  0xfd   : > { %v1035_v44 = vpack.c.bf16 %v551_v41, %v546_v43  ;;  %v965_v45 = vpop.f32.mrb[6].mxu1 }
  0xfe   : > { %v561_v46 = vadd.f32 %v965_v45, %v856_v33  ;;  %v555_v47 = vpop.f32.mrb[7].mxu1 }
  0xff   : > { %v556_v48 = vadd.f32 %v856_v33, %v555_v47 }
 0x101   : > { %v1039_v49 = vpack.c.bf16 %v561_v46, %v556_v48  ;;  %v968_v50 = vpop.f32.mrb[8].mxu1 }
 0x102   : > { %v571_v51 = vadd.f32 %v968_v50, %v856_v33  ;;  %v565_v52 = vpop.f32.mrb[9].mxu1 }
 0x103   : > { %1037 = vmatpush3.bf16.xpose.msk.msra.mxu0 %vm1343_vm2, %v1035_v44  ;;  %v566_v53 = vadd.f32 %v856_v33, %v565_v52 }
 0x104   : > { %1038 = vmatprep.subr.bf16.mxu0 %v1172_v3 }
 0x105   : > { %v1043_v54 = vpack.c.bf16 %v571_v51, %v566_v53  ;;  %v971_v55 = vpop.f32.mrb[10].mxu1 }
 0x106   : > { %v581_v56 = vadd.f32 %v971_v55, %v856_v33  ;;  %v575_v57 = vpop.f32.mrb[11].mxu1 }
 0x107   : > { %v576_v58 = vadd.f32 %v856_v33, %v575_v57 }
 0x109   : > { %v1047_v59 = vpack.c.bf16 %v581_v56, %v576_v58  ;;  %v974_v60 = vpop.f32.mrb[12].mxu1 }
 0x10a   : > { %v591_v61 = vadd.f32 %v974_v60, %v856_v33  ;;  %v585_v62 = vpop.f32.mrb[13].mxu1 }
 0x10b   : > { %1041 = vmatpush3.bf16.xpose.msk.msra.mxu0 %vm1343_vm2, %v1039_v49  ;;  %v586_v63 = vadd.f32 %v856_v33, %v585_v62 }
 0x10c   : > { %1042 = vmatprep.subr.bf16.mxu0 %v1172_v3 }
 0x10d   : > { %v1051_v0 = vpack.c.bf16 %v591_v61, %v586_v63  ;;  %v977_v1 = vpop.f32.mrb[14].mxu1 }
 0x10e   : > { %v601_v2 = vadd.f32 %v977_v1, %v856_v33  ;;  %v595_v4 = vpop.f32.mrb[15].mxu1 }
 0x10f   : > { %v596_v5 = vadd.f32 %v856_v33, %v595_v4 }
 0x111   : > { %v1055_v6 = vpack.c.bf16 %v601_v2, %v596_v5  ;;  %v980_v7 = vpop.f32.mrb[16].mxu1 }
 0x112   : > { %v611_v8 = vadd.f32 %v980_v7, %v856_v33  ;;  %v605_v9 = vpop.f32.mrb[17].mxu1 }
 0x113   : > { %1045 = vmatpush3.bf16.xpose.msk.msra.mxu0 %vm1343_vm2, %v1043_v54  ;;  %v606_v10 = vadd.f32 %v856_v33, %v605_v9 }
 0x114   : > { %1046 = vmatprep.subr.bf16.mxu0 %v1172_v3 }
 0x115   : > { %v1059_v11 = vpack.c.bf16 %v611_v8, %v606_v10 }
 0x11b   : > { %1049 = vmatpush3.bf16.xpose.msk.msra.mxu0 %vm1343_vm2, %v1047_v59 }
 0x11c   : > { %1050 = vmatprep.subr.bf16.mxu0 %v1172_v3 }
 0x123   : > { %1053 = vmatpush3.bf16.xpose.msk.msra.mxu0 %vm1343_vm2, %v1051_v0 }
 0x124   : > { %1054 = vmatprep.subr.bf16.mxu0 %v1172_v3 }
 0x12b   : > { %1057 = vmatpush3.bf16.xpose.msk.msra.mxu0 %vm1343_vm2, %v1055_v6 }
 0x12c   : > { %1058 = vmatprep.subr.bf16.mxu0 %v1172_v3 }
 0x133   : > { %1061 = vmatpush3.bf16.xpose.msk.msra.mxu0 %vm1343_vm2, %v1059_v11 }
 0x13a   : > { %1014 = vmatmul.mubr.msk.f32.vlgmr.msra.gmra.mrb[0].mxu0 %vm336_vm1, %v407_v13 }
 0x20d   : > { %v738_v15 = vpop.f32.mrb[0].mxu0 }
 0x20e   : > { %v739_v16 = vadd.f32 %v873_v14, %v738_v15  ;;  %v1015_v3 = vpop.f32.mrb[1].mxu0 }
 0x210   : > { %742 = vmax.xlane.f32.xlu0 %v739_v16 }
 0x29d   : > { %v743_v17 = vpop.xlane.xlu0 %742 }
 0x29e   : > { %v744_v18 = vsub.f32 %v739_v16, %v743_v17 }
 0x2a0   : > { %v745_v19 = vmul.f32 1.442695, %v744_v18 }
 0x2a2   : > { %1104 = vpow2.f32 %v745_v19 }
 0x2ac   : > { %v1105_v20 = vpop.eup %1104 }
 0x2ad   : > { %747 = vadd.xlane.f32.xlu0 %v1105_v20 }
 0x33a   : > { %v748_v21 = vpop.xlane.xlu0 %747 }
 0x33b   : > { %1106 = vrcp.f32 %v748_v21 }
 0x345   : > { %v1107_v22 = vpop.eup %1106 }
 0x346   : > { %v750_v23 = vmul.f32 %v1107_v22, %v1105_v20 }
 0x348   : > { %751 = vst [vmem:[%s295_s21] sm:$0xff] %v750_v23 }
 0x349   : > { %1121 = shalt.err (!%p1118_p3)
}
 0x34a   : > { %s1122_s16 = scalar_lea.hbm %s1383_s29, 128  ;;  %s1126_s19 = scalar_lea.hbm %s1432_s7, 256 }
 0x34b   : > { %p1123_p4 = scmp.ne.s32.totalorder %s1383_s29, %s1122_s16  ;;  %p1127_p9 = scmp.lt.u32.totalorder %s1383_s29, %s1432_s7 }
 0x34c   : > { %p1128_p10 = scmp.lt.u32.totalorder %s1126_s19, %s1122_s16  ;;  %p1130_p12 = scmp.lt.u32.totalorder %s1122_s16, %s1383_s29 }
 0x34d   : > { %p1124_p7 = pnand %p1123_p4, %p1254_p5 }
 0x34e   : > { %p1129_p11 = por %p1128_p10, %p1127_p9 }
 0x34f   : > { %p1125_p8 = pneg %p1124_p7 }
 0x350   : > { %p1131_p13 = por %p1130_p12, %p1129_p11 }
 0x352   : > { %p1132_p0 = pnand %p1131_p13, %p1125_p8 }
 0x354   : > { %1135 = shalt.err (!%p1132_p0)
}
 0x355   : > { %1062 = dma.vmem_to_hbm [thread:$0]  (%p1254_p5), %s1385_s8, 128, %s1383_s29, %s753_s9  }
 0x356 PF: > { %p1068_p1 = scmp.ge.s32.totalorder %s1170_s27, 2  ;;  %s778_s22 = sand.u32 1, %s1158_s24  }
 0x357   : > { %s779_s23 = scalar_lea.sflag [#allocation3], %s778_s22 }
 0x358   : > { %p1065_p2 = pnand %p1068_p1, %p1258_p6 }
 0x35a   : > { %1153 = dma.done.wait (!%p1065_p2), %s779_s23, 128  }
 0x35b   : > { %1155 = vsyncadd (!%p1065_p2), %s779_s23, 4294967168  ;;  %p17_p3 = scmp.ge.s32.totalorder %s1241_s30, 4   ;;  %s1437_s24 = smov %s1162_s25 }
 0x35c   : > { %s1438_s25 = smov %s1166_s26  ;;  %s1439_s26 = smov %s1252_s10 }
 0x35d   : > { %s1440_s27 = smov %s1241_s30  ;;  %19 = sbr.rel (!%p17_p3) target bundleno = 3 (0x3), region = 89 }
 0x364   :  { %784 = vsyncpa [#allocation3], 1 }
 0x365   :  { %786 = vsyncpa [#allocation3 + $0x1], 1 }

</bundles_post_ra>
